<compile_context>
chip_gen: v7x
topology: tpu7x:2x2x1
jax: 0.10.0
libtpu: 0.0.40
codegen_flags: <defaults>
</compile_context>

<pallas_src>
import jax
import jax.numpy as jnp
from jax import lax
from jax.experimental import pallas as pl
from jax.experimental.pallas import tpu as pltpu


def _round_up(x, m):
    return ((x + m - 1) // m) * m


def _centerloss_mm_kernel(xs_ref, lbl_ref, w_ref, cen_ref, o_ref, acc_ref):
    step = pl.program_id(1)

    @pl.when(step == 0)
    def _():
        acc_ref[...] = jnp.zeros_like(acc_ref)

    xs = xs_ref[...]                                    # (TB, Fp), native dtype
    w = w_ref[...]                                      # (TB, 1)  f32, 0 on pad rows
    lbl = lbl_ref[...]                                  # (TB, 1)  int32

    # Row norms: f32 reduction only (normalized xs is never materialized).
    xf = xs.astype(jnp.float32)
    sumsq = jnp.sum(xf * xf, axis=1, keepdims=True)     # (TB, 1)
    inv = lax.rsqrt(jnp.maximum(sumsq, 1e-24))          # == 1 / max(||x||, 1e-12)

    # S[b, c] = xs[b] . center[c] ; center pre-transposed to (Fp, Cp); MXU, f32 accumulate.
    xs_mm = xs if xs.dtype == cen_ref.dtype else xs.astype(cen_ref.dtype)
    s = jnp.dot(xs_mm, cen_ref[...], preferred_element_type=jnp.float32)  # (TB, Cp)

    # One-hot select of the label column with w*inv folded in; single full 2-D reduce.
    cls_iota = lax.broadcasted_iota(jnp.int32, s.shape, 1)
    coeff = jnp.where(cls_iota == lbl, w * inv, 0.0)    # (TB, Cp)
    dot_term = jnp.sum(coeff * s)                       # sum_b  w*inv*(xs_b . c_{y_b})

    norm_term = jnp.sum(w * (sumsq * inv) * inv)        # sum_b  w*||xn_b||^2

    acc_ref[...] = acc_ref[...] + (norm_term - 2.0 * dot_term)

    @pl.when(step == pl.num_programs(1) - 1)
    def _():
        o_ref[...] = jnp.zeros_like(o_ref) + acc_ref[...]


def _centerloss_gather_kernel(xs_ref, ce_ref, w_ref, o_ref, acc_ref):
    step = pl.program_id(1)

    @pl.when(step == 0)
    def _():
        acc_ref[...] = jnp.zeros_like(acc_ref)

    xf = xs_ref[...].astype(jnp.float32)                # (TB, Fp)
    ce = ce_ref[...].astype(jnp.float32)                # (TB, Fp) gathered centers
    w = w_ref[...]                                      # (TB, 1)

    sumsq = jnp.sum(xf * xf, axis=1, keepdims=True)
    inv = lax.rsqrt(jnp.maximum(sumsq, 1e-24))
    dot = jnp.sum(xf * ce, axis=1, keepdims=True)       # xs_b . c_{y_b}

    acc_ref[...] = acc_ref[...] + jnp.sum(w * ((sumsq * inv) * inv - 2.0 * (dot * inv)))

    @pl.when(step == pl.num_programs(1) - 1)
    def _():
        o_ref[...] = jnp.zeros_like(o_ref) + acc_ref[...]


def center_loss(xs, ys, center, *, tile_b_max=1024, ncores=None,
                c_threshold=1024, matmul_dtype=None):
    """xs: (B, F); ys: (B,) labels or (B, C) one-hot/logits; center: (C, F)."""
    cls_num, feat = center.shape
    batch = xs.shape[0]

    if ncores is None:
        # Only v7x has 2 TensorCores per chip; on v5e/v6e a size-2 "parallel" axis only
        # adds batch padding and grid-step overhead.
        try:
            kind = jax.devices()[0].device_kind.lower()
            ncores = 2 if ("v7" in kind or "7x" in kind) else 1
        except Exception:
            ncores = 1

    # ---- wrapper-side glue: labels, global histogram, per-sample weight ----
    if ys.ndim == 2:
        y = jnp.argmax(ys, axis=1).astype(jnp.int32)
    else:
        y = ys.astype(jnp.int32)
    # TODO(synk): torch.histc on a 2-D float `ys` bins the raw float values; only the
    # integer-label case (histc == per-class bincount) is reproduced here.
    counts = jnp.zeros((cls_num,), jnp.float32).at[y].add(1.0)
    w = (0.5 / (counts[y] + 1.0)).astype(jnp.float32)   # folds the /2 and /cnt divides

    # The w*||c_y||^2 term is a per-sample constant: reduce it to a scalar here so the
    # kernel never needs ||center||^2 (drops csq_ref and its broadcast entirely).
    cen_f32 = center.astype(jnp.float32)
    csq = jnp.sum(cen_f32 * cen_f32, axis=1)
    bias = jnp.sum(w * csq[y])

    # ---- tiling: lane-align F and C, VMEM-budgeted tile_b, minimal batch padding ----
    f_pad = _round_up(feat, 128)
    c_pad = _round_up(cls_num, 128)
    xs_item = jnp.dtype(xs.dtype).itemsize
    mm_dtype = jnp.dtype(matmul_dtype) if matmul_dtype is not None else jnp.dtype(xs.dtype)

    VMEM_BUDGET = 24 * 1024 * 1024          # conservative: fits v7x's 64 MiB with headroom
    center_bytes = 2 * f_pad * c_pad * mm_dtype.itemsize     # resident center (x2 buffers)
    use_gather = (cls_num > c_threshold) or (center_bytes > VMEM_BUDGET // 2)

    if use_gather:
        fixed = 0
        per_row = (2 * f_pad * xs_item      # xs double buffer
                   + 2 * f_pad * 4          # gathered-center double buffer (f32)
                   + 8 * f_pad              # in-kernel f32 temporaries
                   + 2 * 128 * 4)           # (TB,1) weight block (lane-padded, x2 buffers)
    else:
        fixed = center_bytes
        per_row = (2 * f_pad * xs_item      # xs double buffer
                   + 4 * f_pad              # f32 square temporary (sumsq)
                   + 8 * c_pad              # (TB,Cp) S + coeff f32 temporaries
                   + 4 * 128 * 4)           # (TB,1) label+weight blocks (lane-padded, x2)

    avail = max(VMEM_BUDGET - fixed, 8 * per_row)
    tile_cap = max(8, min(tile_b_max, (avail // per_row) // 8 * 8))

    rows_per_core = -(-batch // ncores)
    tiles_per_core = -(-rows_per_core // tile_cap)                 # fewest tiles that fit
    tile_b = _round_up(-(-rows_per_core // tiles_per_core), 8)     # minimal batch padding
    b_pad = ncores * tiles_per_core * tile_b

    vmem_need = fixed + tile_b * per_row
    vmem_limit = int(min(56 << 20, max(16 << 20, 2 * vmem_need)))

    xs_p = jnp.pad(xs, ((0, b_pad - batch), (0, f_pad - feat)))
    w_p = jnp.pad(w, (0, b_pad - batch)).reshape(b_pad, 1)

    row_map = lambda c, i: (c * tiles_per_core + i, 0)
    const_map = lambda c, i: (0, 0)
    out_spec = pl.BlockSpec((8, 128), lambda c, i: (c, 0))
    params = pltpu.CompilerParams(
        dimension_semantics=("parallel", "arbitrary"),
        vmem_limit_bytes=vmem_limit,
    )

    if use_gather:
        # Large class count: gather ce = center[y] once in the wrapper and stream it; the
        # kernel then needs no resident center, no (TB,Cp) temporaries and no matmul.
        ce_p = jnp.pad(cen_f32[y], ((0, b_pad - batch), (0, f_pad - feat)))
        cost = pl.CostEstimate(
            flops=int(8 * b_pad * f_pad),
            transcendentals=int(b_pad),
            bytes_accessed=int(b_pad * f_pad * (xs_item + 4) + b_pad * 4),
        )
        partials = pl.pallas_call(
            _centerloss_gather_kernel,
            out_shape=jax.ShapeDtypeStruct((ncores * 8, 128), jnp.float32),
            grid_spec=pltpu.PrefetchScalarGridSpec(
                num_scalar_prefetch=0,
                grid=(ncores, tiles_per_core),
                in_specs=[
                    pl.BlockSpec((tile_b, f_pad), row_map),   # xs, streamed, native dtype
                    pl.BlockSpec((tile_b, f_pad), row_map),   # gathered centers (f32)
                    pl.BlockSpec((tile_b, 1), row_map),       # per-sample weight
                ],
                out_specs=out_spec,
                scratch_shapes=[pltpu.VMEM((1, 1), jnp.float32)],
            ),
            compiler_params=params,
            cost_estimate=cost,
        )(xs_p, ce_p, w_p)
    else:
        lbl_p = jnp.pad(y, (0, b_pad - batch)).reshape(b_pad, 1)
        # Pre-transposed (Fp, Cp) center in the matmul dtype: no per-tile transpose, and
        # bf16 xs hits the MXU at native rate (f32 stays f32 to preserve accuracy).
        cen_t = jnp.pad(cen_f32, ((0, c_pad - cls_num), (0, f_pad - feat))).T.astype(mm_dtype)
        cost = pl.CostEstimate(
            flops=int(2 * b_pad * f_pad * c_pad + 6 * b_pad * f_pad + 3 * b_pad * c_pad),
            transcendentals=int(b_pad),
            bytes_accessed=int(b_pad * f_pad * xs_item
                               + f_pad * c_pad * mm_dtype.itemsize + b_pad * 8),
        )
        partials = pl.pallas_call(
            _centerloss_mm_kernel,
            out_shape=jax.ShapeDtypeStruct((ncores * 8, 128), jnp.float32),
            grid_spec=pltpu.PrefetchScalarGridSpec(
                num_scalar_prefetch=0,
                grid=(ncores, tiles_per_core),
                in_specs=[
                    pl.BlockSpec((tile_b, f_pad), row_map),   # xs, streamed, native dtype
                    pl.BlockSpec((tile_b, 1), row_map),       # int32 labels
                    pl.BlockSpec((tile_b, 1), row_map),       # per-sample weight
                    pl.BlockSpec((f_pad, c_pad), const_map),  # pre-transposed center (resident)
                ],
                out_specs=out_spec,
                scratch_shapes=[pltpu.VMEM((1, 1), jnp.float32)],
            ),
            compiler_params=params,
            cost_estimate=cost,
        )(xs_p, lbl_p, w_p, cen_t)

    # Each core's partial is replicated across its (8,128) block; pick one lane per core.
    return bias + jnp.sum(partials[0::8, 0])


if __name__ == "__main__":
    B, CLS, FEAT = 8, 4, 32

    key = jax.random.PRNGKey(0)
    k_center, k_xs, k_ys = jax.random.split(key, 3)

    # Deterministic "parameter" init mirroring nn.Parameter(t.rand(cls, feat)).
    center = jax.random.uniform(k_center, (CLS, FEAT), dtype=jnp.float32)
    xs = jax.random.normal(k_xs, (B, FEAT), dtype=jnp.float32)
    ys = jax.random.randint(k_ys, (B,), 0, CLS).astype(jnp.float32)   # float label tensor

    # Pure-JAX reference (direct form of the same math, outside Pallas).
    y_int = ys.astype(jnp.int32)
    xn = xs / jnp.maximum(jnp.linalg.norm(xs, axis=1, keepdims=True), 1e-12)
    ce = center[y_int]
    cnt = jnp.sum(y_int[:, None] == jnp.arange(CLS)[None, :], axis=0).astype(jnp.float32)
    ref = jnp.sum(jnp.sum((xn - ce) ** 2, axis=1) / 2.0 / (cnt[y_int] + 1.0))

    # Matmul (resident-center) path.
    loss_mm = jax.block_until_ready(center_loss(xs, ys, center))
    assert jnp.allclose(loss_mm, ref, rtol=1e-5, atol=1e-4), (loss_mm, ref)

    # Gathered-center path (forced via threshold) — used for very large class counts.
    loss_g = jax.block_until_ready(center_loss(xs, ys, center, c_threshold=0))
    assert jnp.allclose(loss_g, ref, rtol=1e-5, atol=1e-4), (loss_g, ref)

    print("KERNEL_OK")
</pallas_src>

<mosaic_0001>
module attributes {stable_mosaic.version = 11 : i64} {
  func.func @_centerloss_mm_kernel(%arg0: i32, %arg1: i32, %arg2: memref<8x128xf32, #tpu.memory_space<vmem>>, %arg3: memref<8x1xi32, #tpu.memory_space<vmem>>, %arg4: memref<8x1xf32, #tpu.memory_space<vmem>>, %arg5: memref<128x128xf32, #tpu.memory_space<vmem>>, %arg6: memref<8x128xf32, #tpu.memory_space<vmem>>, %arg7: memref<1x1xf32, #tpu.memory_space<vmem>>) attributes {dimension_semantics = [#tpu.dimension_semantics<parallel>, #tpu.dimension_semantics<arbitrary>], iteration_bounds = array<i64: 1, 1>, scalar_prefetch = 0 : i64, scratch_operands = 1 : i64, tpu.core_type = #tpu.core_type<tc>, window_params = [{transform_indices = @transform_0, window_bounds = array<i64: 8, 128>}, {transform_indices = @transform_1, window_bounds = array<i64: 8, 1>}, {transform_indices = @transform_2, window_bounds = array<i64: 8, 1>}, {pipeline_mode = #tpu.pipeline_mode<synchronous>, transform_indices = @transform_3, window_bounds = array<i64: 128, 128>}, {transform_indices = @transform_4, window_bounds = array<i64: 8, 128>}]} {
    %c0_i32 = arith.constant 0 : i32
    %0 = arith.cmpi eq, %arg1, %c0_i32 : i32
    %1 = arith.extui %0 : i1 to i32
    %c0_i32_0 = arith.constant 0 : i32
    %2 = arith.cmpi ne, %1, %c0_i32_0 : i32
    scf.if %2 {
      %cst_20 = arith.constant 0.000000e+00 : f32
      %43 = vector.broadcast %cst_20 : f32 to vector<1x1xf32>
      %c0_21 = arith.constant 0 : index
      %c0_22 = arith.constant 0 : index
      %44 = vector.load %arg7[%c0_21, %c0_22] : memref<1x1xf32, #tpu.memory_space<vmem>>, vector<1x1xf32>
      tpu.vector_store %arg7[%c0_21, %c0_22], %43 {strides = array<i32>} : memref<1x1xf32, #tpu.memory_space<vmem>>, vector<1x1xf32>,
    } else {
    }
    %c0 = arith.constant 0 : index
    %c0_1 = arith.constant 0 : index
    %3 = vector.load %arg2[%c0, %c0_1] : memref<8x128xf32, #tpu.memory_space<vmem>>, vector<8x128xf32>
    %c0_2 = arith.constant 0 : index
    %c0_3 = arith.constant 0 : index
    %4 = vector.load %arg4[%c0_2, %c0_3] : memref<8x1xf32, #tpu.memory_space<vmem>>, vector<8x1xf32>
    %c0_4 = arith.constant 0 : index
    %c0_5 = arith.constant 0 : index
    %5 = vector.load %arg3[%c0_4, %c0_5] : memref<8x1xi32, #tpu.memory_space<vmem>>, vector<8x1xi32>
    %6 = arith.mulf %3, %3 : vector<8x128xf32>
    %cst = arith.constant dense<0.000000e+00> : vector<8xf32>
    %7 = vector.multi_reduction <add>, %6, %cst [1] : vector<8x128xf32> to vector<8xf32>
    %8 = vector.shape_cast %7 : vector<8xf32> to vector<8x1xf32>
    %cst_6 = arith.constant 1.000000e-24 : f32
    %9 = vector.broadcast %cst_6 : f32 to vector<8x1xf32>
    %10 = arith.maximumf %8, %9 : vector<8x1xf32>
    %11 = math.rsqrt %10 : vector<8x1xf32>
    %c0_7 = arith.constant 0 : index
    %c0_8 = arith.constant 0 : index
    %12 = vector.load %arg5[%c0_7, %c0_8] : memref<128x128xf32, #tpu.memory_space<vmem>>, vector<128x128xf32>
    %cst_9 = arith.constant dense<0.000000e+00> : vector<8x128xf32>
    %13 = tpu.matmul %3, %12, %cst_9 {dimension_numbers = #tpu.dot_dimension_numbers<[1], [0], [0], [1], [0, 0, 1, 1], [], []>} : vector<8x128xf32>, vector<128x128xf32>, vector<8x128xf32> -> vector<8x128xf32>
    %14 = tpu.iota {dimensions = array<i32: 1>} : vector<8x128xi32>
    %15 = vector.broadcast %5 : vector<8x1xi32> to vector<8x128xi32>
    %16 = arith.cmpi eq, %14, %15 : vector<8x128xi32>
    %17 = arith.mulf %4, %11 : vector<8x1xf32>
    %cst_10 = arith.constant 0.000000e+00 : f32
    %18 = vector.shape_cast %17 : vector<8x1xf32> to vector<8x1xf32>
    %19 = vector.broadcast %18 : vector<8x1xf32> to vector<8x128xf32>
    %20 = vector.broadcast %cst_10 : f32 to vector<8x128xf32>
    %21 = arith.select %16, %19, %20 : vector<8x128xi1>, vector<8x128xf32>
    %22 = arith.mulf %21, %13 : vector<8x128xf32>
    %23 = vector.shape_cast %22 : vector<8x128xf32> to vector<1x8x128xf32>
    %cst_11 = arith.constant dense<0.000000e+00> : vector<1xf32>
    %24 = vector.multi_reduction <add>, %23, %cst_11 [1, 2] : vector<1x8x128xf32> to vector<1xf32>
    %25 = vector.shape_cast %24 : vector<1xf32> to vector<1x1x1xf32>
    %26 = vector.extract %25[0, 0, 0] : f32 from vector<1x1x1xf32>
    %27 = arith.mulf %8, %11 : vector<8x1xf32>
    %28 = arith.mulf %4, %27 : vector<8x1xf32>
    %29 = arith.mulf %28, %11 : vector<8x1xf32>
    %30 = vector.shape_cast %29 : vector<8x1xf32> to vector<1x8x1xf32>
    %cst_12 = arith.constant dense<0.000000e+00> : vector<1xf32>
    %31 = vector.multi_reduction <add>, %30, %cst_12 [1, 2] : vector<1x8x1xf32> to vector<1xf32>
    %32 = vector.shape_cast %31 : vector<1xf32> to vector<1x1x1xf32>
    %33 = vector.extract %32[0, 0, 0] : f32 from vector<1x1x1xf32>
    %c0_13 = arith.constant 0 : index
    %c0_14 = arith.constant 0 : index
    %34 = vector.load %arg7[%c0_13, %c0_14] : memref<1x1xf32, #tpu.memory_space<vmem>>, vector<1x1xf32>
    %cst_15 = arith.constant 2.000000e+00 : f32
    %35 = arith.mulf %cst_15, %26 : f32
    %36 = arith.subf %33, %35 : f32
    %37 = vector.broadcast %36 : f32 to vector<1x1xf32>
    %38 = arith.addf %34, %37 : vector<1x1xf32>
    %c0_16 = arith.constant 0 : index
    %c0_17 = arith.constant 0 : index
    %39 = vector.load %arg7[%c0_16, %c0_17] : memref<1x1xf32, #tpu.memory_space<vmem>>, vector<1x1xf32>
    tpu.vector_store %arg7[%c0_16, %c0_17], %38 {strides = array<i32>} : memref<1x1xf32, #tpu.memory_space<vmem>>, vector<1x1xf32>,
    %c0_i32_18 = arith.constant 0 : i32
    %40 = arith.cmpi eq, %arg1, %c0_i32_18 : i32
    %41 = arith.extui %40 : i1 to i32
    %c0_i32_19 = arith.constant 0 : i32
    %42 = arith.cmpi ne, %41, %c0_i32_19 : i32
    scf.if %42 {
      %cst_20 = arith.constant 0.000000e+00 : f32
      %43 = vector.broadcast %cst_20 : f32 to vector<8x128xf32>
      %c0_21 = arith.constant 0 : index
      %c0_22 = arith.constant 0 : index
      %44 = vector.load %arg7[%c0_21, %c0_22] : memref<1x1xf32, #tpu.memory_space<vmem>>, vector<1x1xf32>
      %45 = vector.broadcast %44 : vector<1x1xf32> to vector<8x128xf32>
      %46 = arith.addf %43, %45 : vector<8x128xf32>
      %c0_23 = arith.constant 0 : index
      %c0_24 = arith.constant 0 : index
      %47 = vector.load %arg6[%c0_23, %c0_24] : memref<8x128xf32, #tpu.memory_space<vmem>>, vector<8x128xf32>
      tpu.vector_store %arg6[%c0_23, %c0_24], %46 {strides = array<i32>} : memref<8x128xf32, #tpu.memory_space<vmem>>, vector<8x128xf32>,
    } else {
    }
    return
  }
  func.func @transform_0(%arg0: i32, %arg1: i32) -> (i32, i32) {
    %c1_i32 = arith.constant 1 : i32
    %0 = arith.muli %arg0, %c1_i32 : i32
    %1 = arith.addi %0, %arg1 : i32
    %c0_i32 = arith.constant 0 : i32
    %c0_i32_0 = arith.constant 0 : i32
    return %1, %c0_i32 : i32, i32
  }
  func.func @transform_1(%arg0: i32, %arg1: i32) -> (i32, i32) {
    %c1_i32 = arith.constant 1 : i32
    %0 = arith.muli %arg0, %c1_i32 : i32
    %1 = arith.addi %0, %arg1 : i32
    %c0_i32 = arith.constant 0 : i32
    %c0_i32_0 = arith.constant 0 : i32
    return %1, %c0_i32 : i32, i32
  }
  func.func @transform_2(%arg0: i32, %arg1: i32) -> (i32, i32) {
    %c1_i32 = arith.constant 1 : i32
    %0 = arith.muli %arg0, %c1_i32 : i32
    %1 = arith.addi %0, %arg1 : i32
    %c0_i32 = arith.constant 0 : i32
    %c0_i32_0 = arith.constant 0 : i32
    return %1, %c0_i32 : i32, i32
  }
  func.func @transform_3(%arg0: i32, %arg1: i32) -> (i32, i32) {
    %c0_i32 = arith.constant 0 : i32
    %c0_i32_0 = arith.constant 0 : i32
    %c0_i32_1 = arith.constant 0 : i32
    return %c0_i32, %c0_i32_0 : i32, i32
  }
  func.func @transform_4(%arg0: i32, %arg1: i32) -> (i32, i32) {
    %c0_i32 = arith.constant 0 : i32
    %c0_i32_0 = arith.constant 0 : i32
    return %arg0, %c0_i32 : i32, i32
  }
}

</mosaic_0001>

<bundles_post_ra>
// kernel: tpu_custom_call.1
= control target key start
LH: loop header
LB: loop body
LE: loop exit
PB: predicated region body
PF: predicated region fallthrough
CT: control target
= control target key end

     0   :  { %9 = vsyncpa [#allocation4], 0  ;;  %s484_s0 = inlined_call_operand.vmem [shape: f32[8,128], index: 0, kind: input, shape index: {}]   ;;  %s485_s1 = inlined_call_operand.vmem [shape: s32[8,1], index: 1, kind: input, shape index: {}]   ;;  %s486_s2 = inlined_call_operand.vmem [shape: f32[8,1], index: 2, kind: input, shape index: {}]   ;;  %s487_s3 = inlined_call_operand.hbm [shape: f32[128,128], index: 3, kind: input, shape index: {}]   ;;  %s488_s4 = inlined_call_operand.hbm [shape: f32[8,128], index: 4, kind: output, shape index: {}]  }
   0x1   :  { %10 = vsyncpa [#allocation5], 0  ;;  %s416_s15 = smov [#allocation3]   ;;  %s368_s19 = scalar_lea.hbm %s487_s3, 2048 }
   0x2   :  { %s40_s16 = sshll.u32 %s416_s15, 4  ;;  %p369_p0 = scmp.ne.s32.totalorder %s487_s3, %s368_s19  ;;  %s41_s16 = int_to_ptr.vmem [resolvable:$true] %s40_s16 }
   0x3   :  { %p372_p1 = scmp.lt.u32.totalorder %s368_s19, %s487_s3 }
   0x5   :  { %p374_p2 = pnand %p372_p1, %p369_p0 }
   0x7   :  { %377 = shalt.err (!%p374_p2)
}
   0x8   :  { %s378_s24 = scalar_lea.vmem %s41_s16, 2048  ;;  %p383_p4 = scmp.lt.s32.totalorder %s41_s16, %s41_s16 }
   0x9   :  { %p379_p3 = scmp.ne.s32.totalorder %s41_s16, %s378_s24  ;;  %p384_p5 = scmp.lt.s32.totalorder %s378_s24, %s378_s24 }
   0xb   :  { %p385_p6 = por %p384_p5, %p383_p4 }
   0xd   :  { %p386_p7 = pnand %p385_p6, %p379_p3 }
   0xf   :  { %389 = shalt.err (!%p386_p7)
}
  0x10   :  { %s417_s25 = smov 128   ;;  %s418_s26 = smov 8  }
  0x11   :  { %46 = dma.hbm_to_vmem [thread:$0]  %s487_s3, 2048, %s41_s16, [#allocation4], %s417_s25, %s417_s25, %s418_s26  }
  0x12   :  { %412 = dma.done.wait [#allocation4], 2048  }
  0x13   :  { %413 = vsyncadd [#allocation4], 4294965248  ;;  %vm87_vm0 = vcmask 0   ;;  %v419_v0 = vmov 0.0|0.0   ;;  %v420_v1 = vmov 0.0   ;;  %vm421_vm1 = vmmov 0  }
  0x14   :  { %328 = vmatprep.subr.bf16.mxu0 %v419_v0  ;;  %88 = vst.msk [vmem:[#allocation2] sm:$0x1] %vm87_vm0, %v420_v1  ;;  %325 = vmatprep.mubr.msk.f32.mxu0 %vm421_vm1, %v420_v1  ;;  %v89_v2 = vld [vmem:[%s484_s0] sm:$0xff]  ;;  %v98_v4 = vld [vmem:[#allocation3 + $0x8] sm:$0xff]  ;;  %v99_v7 = vld [vmem:[#allocation3 + $0x10] sm:$0xff]  ;;  %v422_v28 = vmov 0   ;;  %v183_v40 = vlaneseq }
  0x15   :  { %v97_v3 = vld [vmem:[#allocation3] sm:$0xff]  ;;  %v92_v5 = vmul.f32 %v89_v2, %v89_v2  ;;  %v100_v8 = vld [vmem:[#allocation3 + $0x18] sm:$0xff]  ;;  %v102_v11 = vld [vmem:[#allocation3 + $0x28] sm:$0xff]  ;;  %364 = vset.pattern.permute.xlu0 %v422_v28  ;;  %365 = vset.pattern.permute.xlu1 %v422_v28  ;;  %vm209_vm3 = vcmask 7168   ;;  %s423_s9 = smov [#allocation6]  }
  0x16   :  { %v329_v6 = vpack.c.bf16 %v98_v4, %v97_v3  ;;  %v332_v9 = vpack.c.bf16 %v100_v8, %v99_v7  ;;  %v101_v10 = vld [vmem:[#allocation3 + $0x20] sm:$0xff]  ;;  %v103_v13 = vld [vmem:[#allocation3 + $0x30] sm:$0xff]  ;;  %v104_v14 = vld [vmem:[#allocation3 + $0x38] sm:$0xff]  ;;  %v184_v41 = vand.u32 127, %v183_v40  ;;  %s248_s10 = sshll.u32 %s423_s9, 4  ;;  %s249_s10 = int_to_ptr.vmem [resolvable:$true] %s248_s10 }
  0x17   :  { %93 = vadd.xlane.f32.xlu0 %v92_v5  ;;  %v335_v12 = vpack.c.bf16 %v102_v11, %v101_v10  ;;  %v338_v15 = vpack.c.bf16 %v104_v14, %v103_v13  ;;  %v105_v16 = vld [vmem:[#allocation3 + $0x40] sm:$0xff]  ;;  %v106_v17 = vld [vmem:[#allocation3 + $0x48] sm:$0xff]  ;;  %v107_v19 = vld [vmem:[#allocation3 + $0x50] sm:$0xff]  ;;  %s390_s11 = scalar_lea.vmem %s249_s10, 128  ;;  %p395_p9 = scmp.lt.s32.totalorder %s249_s10, %s249_s10 }
  0x18   :  { %330 = vmatpush3.bf16.msra.mxu0 %v329_v6  ;;  %v341_v18 = vpack.c.bf16 %v106_v17, %v105_v16  ;;  %v108_v20 = vld [vmem:[#allocation3 + $0x58] sm:$0xff]  ;;  %v109_v22 = vld [vmem:[#allocation3 + $0x60] sm:$0xff]  ;;  %v110_v23 = vld [vmem:[#allocation3 + $0x68] sm:$0xff]  ;;  %p391_p8 = scmp.ne.s32.totalorder %s249_s10, %s390_s11  ;;  %p396_p10 = scmp.lt.s32.totalorder %s390_s11, %s390_s11 }
  0x19   :  { %331 = vmatprep.subr.bf16.mxu0 %v419_v0  ;;  %v344_v21 = vpack.c.bf16 %v108_v20, %v107_v19  ;;  %v347_v24 = vpack.c.bf16 %v110_v23, %v109_v22  ;;  %v111_v25 = vld [vmem:[#allocation3 + $0x70] sm:$0xff]  ;;  %v112_v26 = vld [vmem:[#allocation3 + $0x78] sm:$0xff] }
  0x1a   :  { %v350_v27 = vpack.c.bf16 %v112_v26, %v111_v25  ;;  %v91_v29 = vld [vmem:[%s485_s1] sm:$0xff]  ;;  %p397_p11 = por %p396_p10, %p395_p9 }
  0x1b   :  { %v90_v32 = vld [vmem:[%s486_s2] sm:$0xff] }
  0x1c   :  { %333 = vmatpush3.bf16.msra.mxu0 %v332_v9  ;;  %v220_v61 = vld [vmem:[#allocation2] sm:$0x1]  ;;  %p398_p12 = pnand %p397_p11, %p391_p8 }
  0x1d   :  { %334 = vmatprep.subr.bf16.mxu0 %v419_v0 }
  0x20   :  { %336 = vmatpush3.bf16.msra.mxu0 %v335_v12 }
  0x21   :  { %337 = vmatprep.subr.bf16.mxu0 %v419_v0 }
  0x24   :  { %339 = vmatpush3.bf16.msra.mxu0 %v338_v15 }
  0x25   :  { %340 = vmatprep.subr.bf16.mxu0 %v419_v0 }
  0x28   :  { %342 = vmatpush3.bf16.msra.mxu0 %v341_v18 }
  0x29   :  { %343 = vmatprep.subr.bf16.mxu0 %v419_v0 }
  0x2c   :  { %345 = vmatpush3.bf16.msra.mxu0 %v344_v21 }
  0x2d   :  { %346 = vmatprep.subr.bf16.mxu0 %v419_v0  ;;  %186 = vperm.xlu0 %364, %v91_v29  }
  0x30   :  { %348 = vmatpush3.bf16.msra.mxu0 %v347_v24 }
  0x31   :  { %349 = vmatprep.subr.bf16.mxu0 %v419_v0 }
  0x34   :  { %351 = vmatpush3.bf16.msra.mxu0 %v350_v27 }
  0x37   :  { %326 = vmatmul.mubr.f32.vlgmr.msra.gmra.mrb[0].mxu0 %v89_v2 }
  0xa4   :  { %v94_v30 = vpop.xlane.xlu0 %93 }
  0xa5   :  { %v95_v31 = vmax.f32 %v94_v30, 1e-24 }
  0xa7   :  { %366 = vrsqrt.f32 %v95_v31 }
  0xac   :  { %v187_v42 = vpop.permute.xlu0 %186 }
  0xad   :  { %vm188_vm2 = vcmp.eq.s32.totalorder %v184_v41, %v187_v42 }
  0xb1   :  { %v367_v33 = vpop.eup %366 }
  0xb2   :  { %v206_v34 = vmul.f32 %v367_v33, %v94_v30  ;;  %v189_v35 = vmul.f32 %v367_v33, %v90_v32 }
  0xb4   :  { %v207_v36 = vmul.f32 %v206_v34, %v90_v32  ;;  %192 = vperm.xlu1 %365, %v189_v35  }
  0xb6   :  { %v208_v37 = vmul.f32 %v367_v33, %v207_v36 }
  0xb8   :  { %v210_v46 = vsel %vm209_vm3, %v208_v37, 0.0 }
 0x10a   :  { %v179_v38 = vpop.f32.mrb[0].mxu0 }
 0x10b   :  { %v327_v39 = vpop.f32.mrb[1].mxu0 }
 0x133   :  { %v193_v43 = vpop.permute.xlu1 %192 }
 0x134   :  { %v195_v44 = vsel %vm188_vm2, %v193_v43, 0.0 }
 0x135   :  { %v196_v45 = vmul.f32 %v195_v44, %v179_v38 }
 0x137   :  { %197 = vadd.xlane.f32.xlu1 %v196_v45 }
 0x13b   :  { %211 = vadd.xlane.f32.xlu1 %v210_v46 }
 0x1c4   :  { %v198_v47 = vpop.xlane.xlu1 %197 }
 0x1c5   :  { %v199_v48 = vrot.slane %v198_v47, 4 }
 0x1c7   :  { %v200_v49 = vadd.f32 %v199_v48, %v198_v47 }
 0x1c8   :  { %v212_v50 = vpop.xlane.xlu1 %211 }
 0x1c9   :  { %v201_v51 = vrot.slane %v200_v49, 2  ;;  %v213_v52 = vrot.slane %v212_v50, 4 }
 0x1cb   :  { %v214_v53 = vadd.f32 %v213_v52, %v212_v50  ;;  %v202_v54 = vadd.f32 %v201_v51, %v200_v49 }
 0x1cd   :  { %v215_v55 = vrot.slane %v214_v53, 2  ;;  %v203_v56 = vrot.slane %v202_v54, 1 }
 0x1cf   :  { %v204_v57 = vadd.f32 %v203_v56, %v202_v54  ;;  %v216_v58 = vadd.f32 %v215_v55, %v214_v53 }
 0x1d1   :  { %352 = vpush %v204_v57  ;;  %v217_v59 = vrot.slane %v216_v58, 1 }
 0x1d3   :  { %v218_v60 = vadd.f32 %v217_v59, %v216_v58 }
 0x1d5   :  { %354 = vpush %v218_v60 }
 0x202   :  { %s353_s1 = spop %352 }
 0x203   :  { %s221_s2 = smul.f32 2.0, %s353_s1 }
 0x206   :  { %s355_s7 = spop %354 }
 0x207   :  { %s222_s8 = ssub.f32 %s355_s7, %s221_s2 }
 0x209   :  { %v223_v62 = vstv %s222_s8 }
 0x20a   :  { %v224_v63 = vadd.f32 %v223_v62, %v220_v61 }
 0x20c   :  { %226 = vst.msk [vmem:[#allocation2] sm:$0x1] %vm87_vm0, %v224_v63 }
 0x213   :  { %v275_v0 = vld [vmem:[#allocation2] ss:$0 sm:$0xff] }
 0x214   :  { %237 = vperm.xlu1 %365, %v275_v0  }
 0x293   :  { %v238_v1 = vpop.permute.xlu1 %237 }
 0x294   :  { %241 = vst [vmem:[#allocation6] sm:$0xff] %v238_v1 }
 0x295   :  { %401 = shalt.err (!%p398_p12)
}
 0x296   :  { %s402_s14 = scalar_lea.hbm %s488_s4, 128 }
 0x297   :  { %p403_p13 = scmp.ne.s32.totalorder %s488_s4, %s402_s14  ;;  %p406_p0 = scmp.lt.u32.totalorder %s402_s14, %s488_s4 }
 0x299   :  { %p408_p1 = pnand %p406_p0, %p403_p13 }
 0x29b   :  { %411 = shalt.err (!%p408_p1)
}
 0x29c   :  { %251 = dma.vmem_to_hbm [thread:$0]  %s249_s10, 128, %s488_s4, [#allocation5]  }
 0x29d   :  { %414 = dma.done.wait [#allocation5], 128  }
 0x29e   :  { %415 = vsyncadd [#allocation5], 4294967168 }
 0x29f   :  { %255 = vsyncpa [#allocation4], 1 }
 0x2a0   :  { %256 = vsyncpa [#allocation5], 1 }

</bundles_post_ra>
